<compile_context>
chip_gen: v7x
topology: tpu7x:2x2x1
jax: 0.10.0
libtpu: 0.0.40
codegen_flags: <defaults>
</compile_context>

<pallas_src>
import functools
import math

import jax
import jax.numpy as jnp
from jax.experimental import pallas as pl
from jax.experimental.pallas import tpu as pltpu


# --------------------------------------------------------------------------- #
# Kernel: fused Linear(+ReLU) stack on one row tile
# --------------------------------------------------------------------------- #
def _stack_kernel(x_ref, *args, num_layers, apply_relu):
    # args = (w_0, b_0, w_1, b_1, ..., w_{n-1}, b_{n-1}, o_ref)
    o_ref = args[-1]
    h = x_ref[...]                                     # (TR, IN_lanes), io_dtype
    for l in range(num_layers):
        w = args[2 * l][...]                           # (IN_lanes, OUT_lanes), io_dtype
        b = args[2 * l + 1][...]                       # (1, OUT_lanes), f32
        y = jnp.dot(h.astype(w.dtype), w,
                    preferred_element_type=jnp.float32)
        y = y + b                                      # epilogue stays f32 (v5e-safe)
        if apply_relu:
            y = jnp.maximum(y, 0.0)                    # nn.ReLU
        h = y
    o_ref[...] = h.astype(o_ref.dtype)


# --------------------------------------------------------------------------- #
# Helpers
# --------------------------------------------------------------------------- #
def _round_up(x, m):
    return ((x + m - 1) // m) * m


def _vmem_capacity_bytes():
    try:
        return int(pltpu.get_tpu_info().vmem_capacity_bytes)
    except Exception:
        return 64 * 1024 * 1024        # v7x (smallest per-TC VMEM) as safe default


def _resident_bytes_estimate(layers, f, itemsize):
    lane_unit = 128 // f
    total = 0
    prev = layers[0][0].shape[0]
    for w, _ in layers:
        out_pad = _round_up(w.shape[1], lane_unit)
        total += (f * prev) * (f * out_pad) * itemsize
        prev = out_pad
    return total


def _choose_row_tile(folded_rows, per_row_bytes, vmem_cap):
    """Row tile (multiple of 8): VMEM-bounded, <=1024, balanced, >=2 tiles if possible."""
    budget = max(vmem_cap // 8, 2 << 20)              # pipeline working-set budget
    tr_cap = max(8, min(1024, (budget // per_row_bytes) // 8 * 8))
    n_tiles = max(1, -(-folded_rows // tr_cap))
    if folded_rows >= 16:
        n_tiles = max(n_tiles, 2)                      # let both v7x TCs get a shard
    tr = max(8, _round_up(-(-folded_rows // n_tiles), 8))
    return min(tr, tr_cap)


# --------------------------------------------------------------------------- #
# One-time weight preparation (hoisted out of the forward path)
# --------------------------------------------------------------------------- #
def prepare_linear_stack(layers, io_dtype=jnp.float32):
    """Pre-fold the stack's weights once.

    layers: list of (W, b) with W shaped (in, out) (transpose of torch Linear.weight).
    io_dtype: dtype for x / W / output (f32 = exact; bf16 = ~2x HBM-byte win).
    """
    n = len(layers)
    assert n >= 1
    in0 = int(layers[0][0].shape[0])
    out_last = int(layers[-1][0].shape[1])
    for li in range(1, n):
        assert layers[li][0].shape[0] == layers[li - 1][0].shape[1], "layer dim mismatch"

    itemsize = jnp.dtype(io_dtype).itemsize

    # Fold factor f: pack f logical rows into one lane-dense 128-wide folded row.
    f = 1
    if in0 < 128 and 128 % in0 == 0:
        cand = 128 // in0
        if _resident_bytes_estimate(layers, cand, itemsize) <= 12 * 1024 * 1024:
            f = cand
    lane_unit = 128 // f                     # pad out dims to this -> folded lanes %128==0
    # TODO(synk): tile the weight/K dimension for very wide stacks whose resident
    # folded weights would not fit in VMEM (not reachable for typical LinearStack sizes).

    params = []
    resident_bytes = 0
    prev_pad = in0                           # first layer's input is x itself (unpadded)
    for li, (w, b) in enumerate(layers):
        d_in, d_out = int(w.shape[0]), int(w.shape[1])
        out_pad = _round_up(d_out, lane_unit)
        w_p = jnp.zeros((prev_pad, out_pad), jnp.float32).at[:d_in, :d_out].set(
            w.astype(jnp.float32))
        b_p = jnp.zeros((out_pad,), jnp.float32).at[:d_out].set(b.astype(jnp.float32))
        if f > 1:
            # Block-diagonal fold: pure layout trick, identical math, lane-dense tiles.
            w_f = jnp.kron(jnp.eye(f, dtype=jnp.float32), w_p)       # (f*in, f*out_pad)
            b_f = jnp.tile(b_p, f)                                   # (f*out_pad,)
        else:
            w_f, b_f = w_p, b_p
        w_f = w_f.astype(io_dtype)
        b_f = b_f.reshape(1, -1)             # bias stays f32 (added to f32 accumulator)
        params.append((w_f, b_f))
        resident_bytes += w_f.size * w_f.dtype.itemsize + b_f.size * 4
        prev_pad = out_pad

    return dict(
        params=tuple(params),
        fold=f,
        in_features=in0,
        out_features=out_last,
        out_pad_last=prev_pad,
        io_dtype=io_dtype,
        resident_bytes=int(resident_bytes),
    )


# --------------------------------------------------------------------------- #
# Forward
# --------------------------------------------------------------------------- #
def linear_stack_forward(x, prepared, activation=True):
    params = prepared["params"]
    f = prepared["fold"]
    in0 = prepared["in_features"]
    out_last = prepared["out_features"]
    out_pad = prepared["out_pad_last"]
    io_dtype = prepared["io_dtype"]
    n = len(params)
    itemsize = jnp.dtype(io_dtype).itemsize

    lead = x.shape[:-1]
    assert x.shape[-1] == in0
    rows = math.prod(lead) if lead else 1

    x2d = x.reshape(rows, in0)
    rows_f = _round_up(rows, f)
    if rows_f != rows:
        # Tiny pad (< f rows) only when the row count isn't a multiple of the fold.
        x2d = jnp.pad(x2d, ((0, rows_f - rows), (0, 0)))
    folded_rows = rows_f // f
    # Row-major reshape is free in HBM; lane-dense (.,128) folded rows for the kernel.
    # The astype is a no-op for f32 and typically fuses into the producer under jit.
    x_folded = x2d.reshape(folded_rows, f * in0).astype(io_dtype)

    in_lanes = f * in0
    out_lanes = f * out_pad
    x_row_bytes = in_lanes * itemsize
    out_row_bytes = out_lanes * itemsize
    inter_row_bytes = 4 * sum(p[0].shape[1] for p in params)        # f32 intermediates
    per_row_bytes = 2 * (x_row_bytes + out_row_bytes) + inter_row_bytes

    vmem_cap = _vmem_capacity_bytes()
    tr = _choose_row_tile(folded_rows, per_row_bytes, vmem_cap)
    grid = (pl.cdiv(folded_rows, tr),)

    in_specs = [pl.BlockSpec((tr, in_lanes), lambda i: (i, 0))]     # x: tiled over rows
    flat_args = [x_folded]
    for (w_f, b_f) in params:
        in_specs.append(pl.BlockSpec(w_f.shape, lambda i: (0, 0)))  # W_l: resident
        in_specs.append(pl.BlockSpec(b_f.shape, lambda i: (0, 0)))  # b_l: resident
        flat_args.extend([w_f, b_f])

    vmem_need = prepared["resident_bytes"] + tr * per_row_bytes + (4 << 20)
    vmem_limit = int(min(max(vmem_need, 16 << 20), max(16 << 20, vmem_cap // 2)))

    flops = 2 * folded_rows * sum(int(p[0].shape[0]) * int(p[0].shape[1]) for p in params)
    bytes_accessed = (x_folded.size * itemsize
                      + folded_rows * out_lanes * itemsize
                      + prepared["resident_bytes"])

    out_folded = pl.pallas_call(
        functools.partial(_stack_kernel, num_layers=n, apply_relu=activation),
        out_shape=jax.ShapeDtypeStruct((folded_rows, out_lanes), io_dtype),
        grid_spec=pltpu.PrefetchScalarGridSpec(
            num_scalar_prefetch=0,
            grid=grid,
            in_specs=in_specs,
            out_specs=pl.BlockSpec((tr, out_lanes), lambda i: (i, 0)),
        ),
        compiler_params=pltpu.CompilerParams(
            dimension_semantics=("parallel",),       # independent row tiles (megacore)
            vmem_limit_bytes=vmem_limit,
        ),
        cost_estimate=pl.CostEstimate(
            flops=int(flops), transcendentals=0, bytes_accessed=int(bytes_accessed)),
    )(*flat_args)

    out = out_folded.reshape(rows_f, out_pad)[:rows, :out_last]
    return out.reshape(*lead, out_last)


def reference_forward(x, layers, activation=True):
    h = x
    for (w, b) in layers:
        h = h @ w + b
        if activation:
            h = jnp.maximum(h, 0.0)
    return h


# --------------------------------------------------------------------------- #
# Demo / correctness check
# --------------------------------------------------------------------------- #
if __name__ == "__main__":
    batch, seq, in_features, out_features = 2, 8, 32, 64

    key = jax.random.PRNGKey(0)
    kx, kw0, kb0, kw1, kb1, kx2 = jax.random.split(key, 6)

    x = jax.random.normal(kx, (batch, seq, in_features), dtype=jnp.float32)

    bound0 = 1.0 / (in_features ** 0.5)
    w0 = jax.random.uniform(kw0, (in_features, out_features),
                            minval=-bound0, maxval=bound0, dtype=jnp.float32)
    b0 = jax.random.uniform(kb0, (out_features,),
                            minval=-bound0, maxval=bound0, dtype=jnp.float32)

    # ---- n=1 (default LinearStack config), activation_fn=nn.ReLU, f32 (exact) ----
    layers1 = [(w0, b0)]
    prep1 = prepare_linear_stack(layers1)                    # folding hoisted to init
    out1 = jax.block_until_ready(linear_stack_forward(x, prep1, activation=True))
    ref1 = reference_forward(x, layers1, activation=True)
    assert out1.shape == (batch, seq, out_features)
    assert jnp.allclose(out1, ref1, atol=1e-5, rtol=1e-5)

    # ---- ragged row count (rows=15): fold-pad + ragged boundary tile path ----
    x2 = jax.random.normal(kx2, (3, 5, in_features), dtype=jnp.float32)
    out2 = jax.block_until_ready(linear_stack_forward(x2, prep1, activation=True))
    ref2 = reference_forward(x2, layers1, activation=True)
    assert out2.shape == (3, 5, out_features)
    assert jnp.allclose(out2, ref2, atol=1e-5, rtol=1e-5)

    # ---- n=2 stack fused into a single pallas_call ----
    bound1 = 1.0 / (out_features ** 0.5)
    w1 = jax.random.uniform(kw1, (out_features, out_features),
                            minval=-bound1, maxval=bound1, dtype=jnp.float32)
    b1 = jax.random.uniform(kb1, (out_features,),
                            minval=-bound1, maxval=bound1, dtype=jnp.float32)
    layers2 = [(w0, b0), (w1, b1)]
    prep2 = prepare_linear_stack(layers2)
    out3 = jax.block_until_ready(linear_stack_forward(x, prep2, activation=True))
    ref3 = reference_forward(x, layers2, activation=True)
    assert out3.shape == (batch, seq, out_features)
    assert jnp.allclose(out3, ref3, atol=1e-5, rtol=1e-5)

    # ---- optional bf16 I/O path (HBM-byte win), f32 MXU accumulation ----
    prep_bf16 = prepare_linear_stack(layers2, io_dtype=jnp.bfloat16)
    out4 = jax.block_until_ready(linear_stack_forward(x, prep_bf16, activation=True))
    assert out4.dtype == jnp.bfloat16
    assert jnp.allclose(out4.astype(jnp.float32), ref3, atol=5e-2, rtol=5e-2)

    print("KERNEL_OK")
</pallas_src>

<mosaic_0001>
module attributes {stable_mosaic.version = 11 : i64} {
  func.func @_stack_kernel(%arg0: i32, %arg1: memref<8x128xf32, #tpu.memory_space<vmem>>, %arg2: memref<128x256xf32, #tpu.memory_space<vmem>>, %arg3: memref<1x256xf32, #tpu.memory_space<vmem>>, %arg4: memref<8x256xf32, #tpu.memory_space<vmem>>) attributes {dimension_semantics = [#tpu.dimension_semantics<parallel>], iteration_bounds = array<i64: 1>, scalar_prefetch = 0 : i64, scratch_operands = 0 : i64, tpu.core_type = #tpu.core_type<tc>, window_params = [{transform_indices = @transform_0, window_bounds = array<i64: 8, 128>}, {pipeline_mode = #tpu.pipeline_mode<synchronous>, transform_indices = @transform_1, window_bounds = array<i64: 128, 256>}, {pipeline_mode = #tpu.pipeline_mode<synchronous>, transform_indices = @transform_2, window_bounds = array<i64: 1, 256>}, {transform_indices = @transform_3, window_bounds = array<i64: 8, 256>}]} {
    %c0 = arith.constant 0 : index
    %c0_0 = arith.constant 0 : index
    %0 = vector.load %arg1[%c0, %c0_0] : memref<8x128xf32, #tpu.memory_space<vmem>>, vector<8x128xf32>
    %c0_1 = arith.constant 0 : index
    %c0_2 = arith.constant 0 : index
    %1 = vector.load %arg2[%c0_1, %c0_2] : memref<128x256xf32, #tpu.memory_space<vmem>>, vector<128x256xf32>
    %c0_3 = arith.constant 0 : index
    %c0_4 = arith.constant 0 : index
    %2 = vector.load %arg3[%c0_3, %c0_4] : memref<1x256xf32, #tpu.memory_space<vmem>>, vector<1x256xf32>
    %cst = arith.constant dense<0.000000e+00> : vector<8x256xf32>
    %3 = tpu.matmul %0, %1, %cst {dimension_numbers = #tpu.dot_dimension_numbers<[1], [0], [0], [1], [0, 0, 1, 1], [], []>} : vector<8x128xf32>, vector<128x256xf32>, vector<8x256xf32> -> vector<8x256xf32>
    %4 = vector.broadcast %2 : vector<1x256xf32> to vector<8x256xf32>
    %5 = arith.addf %3, %4 : vector<8x256xf32>
    %cst_5 = arith.constant 0.000000e+00 : f32
    %6 = vector.broadcast %cst_5 : f32 to vector<8x256xf32>
    %7 = arith.maximumf %5, %6 : vector<8x256xf32>
    %c0_6 = arith.constant 0 : index
    %c0_7 = arith.constant 0 : index
    %8 = vector.load %arg4[%c0_6, %c0_7] : memref<8x256xf32, #tpu.memory_space<vmem>>, vector<8x256xf32>
    tpu.vector_store %arg4[%c0_6, %c0_7], %7 {strides = array<i32>} : memref<8x256xf32, #tpu.memory_space<vmem>>, vector<8x256xf32>,
    return
  }
  func.func @transform_0(%arg0: i32) -> (i32, i32) {
    %c0_i32 = arith.constant 0 : i32
    %c0_i32_0 = arith.constant 0 : i32
    return %arg0, %c0_i32 : i32, i32
  }
  func.func @transform_1(%arg0: i32) -> (i32, i32) {
    %c0_i32 = arith.constant 0 : i32
    %c0_i32_0 = arith.constant 0 : i32
    %c0_i32_1 = arith.constant 0 : i32
    return %c0_i32, %c0_i32_0 : i32, i32
  }
  func.func @transform_2(%arg0: i32) -> (i32, i32) {
    %c0_i32 = arith.constant 0 : i32
    %c0_i32_0 = arith.constant 0 : i32
    %c0_i32_1 = arith.constant 0 : i32
    return %c0_i32, %c0_i32_0 : i32, i32
  }
  func.func @transform_3(%arg0: i32) -> (i32, i32) {
    %c0_i32 = arith.constant 0 : i32
    %c0_i32_0 = arith.constant 0 : i32
    return %arg0, %c0_i32 : i32, i32
  }
}

</mosaic_0001>

<bundles_post_ra>
// kernel: tpu_custom_call.1
= control target key start
LH: loop header
LB: loop body
LE: loop exit
PB: predicated region body
PF: predicated region fallthrough
CT: control target
= control target key end

     0   :  { %8 = vsyncpa [#allocation3], 0  ;;  %s370_s0 = inlined_call_operand.hbm [shape: f32[4,128], index: 0, kind: input, shape index: {}]   ;;  %s371_s1 = inlined_call_operand.hbm [shape: f32[128,256], index: 1, kind: input, shape index: {}]   ;;  %s372_s2 = inlined_call_operand.vmem [shape: f32[1,256], index: 2, kind: input, shape index: {}]   ;;  %s373_s3 = inlined_call_operand.hbm [shape: f32[4,256], index: 3, kind: output, shape index: {}]  }
   0x1   :  { %9 = vsyncpa [#allocation6], 0 }
   0x2   :  { %10 = vsyncpa [#allocation4], 0 }
   0x3   :  { %15 = vsyncadd [#allocation3], 64  ;;  %s301_s12 = smov [#allocation2]   ;;  %s229_s16 = scalar_lea.hbm %s370_s0, 64 }
   0x4   :  { %s16_s13 = sshll.u32 %s301_s12, 4  ;;  %p230_p0 = scmp.ne.s32.totalorder %s370_s0, %s229_s16  ;;  %s17_s13 = int_to_ptr.vmem [resolvable:$true] %s16_s13 }
   0x5   :  { %p233_p1 = scmp.lt.u32.totalorder %s229_s16, %s370_s0 }
   0x7   :  { %p235_p2 = pnand %p233_p1, %p230_p0 }
   0x9   :  { %238 = shalt.err (!%p235_p2)
}
   0xa   :  { %s239_s21 = scalar_lea.vmem %s17_s13, 64  ;;  %s243_s22 = scalar_lea.vmem %s17_s13, 128 }
   0xb   :  { %p240_p3 = scmp.ne.s32.totalorder %s17_s13, %s239_s21  ;;  %p244_p4 = scmp.lt.s32.totalorder %s17_s13, %s17_s13 }
   0xc   :  { %p245_p5 = scmp.lt.s32.totalorder %s243_s22, %s239_s21 }
   0xe   :  { %p246_p6 = por %p245_p5, %p244_p4 }
  0x10   :  { %p247_p7 = pnand %p246_p6, %p240_p3 }
  0x12   :  { %250 = shalt.err (!%p247_p7)
}
  0x13   :  { %s302_s23 = smov 64   ;;  %s303_s24 = smov 4  }
  0x14   :  { %22 = dma.hbm_to_vmem [thread:$0]  %s370_s0, 64, %s17_s13, [#allocation3], %s302_s23, %s302_s23, %s303_s24  }
  0x15   :  { %s304_s27 = smov [#allocation5]   ;;  %s251_s4 = scalar_lea.hbm %s371_s1, 4096 }
  0x16   :  { %s28_s28 = sshll.u32 %s304_s27, 4  ;;  %p252_p8 = scmp.ne.s32.totalorder %s371_s1, %s251_s4  ;;  %s29_s28 = int_to_ptr.vmem [resolvable:$true] %s28_s28 }
  0x17   :  { %p255_p9 = scmp.lt.u32.totalorder %s251_s4, %s371_s1 }
  0x19   :  { %p257_p10 = pnand %p255_p9, %p252_p8 }
  0x1b   :  { %260 = shalt.err (!%p257_p10)
}
  0x1c   :  { %s261_s9 = scalar_lea.vmem %s29_s28, 4096  ;;  %p266_p12 = scmp.lt.s32.totalorder %s29_s28, %s29_s28 }
  0x1d   :  { %p262_p11 = scmp.ne.s32.totalorder %s29_s28, %s261_s9  ;;  %p267_p13 = scmp.lt.s32.totalorder %s261_s9, %s261_s9 }
  0x1f   :  { %p268_p0 = por %p267_p13, %p266_p12 }
  0x21   :  { %p269_p1 = pnand %p268_p0, %p262_p11 }
  0x23   :  { %272 = shalt.err (!%p269_p1)
}
  0x24   :  { %s305_s0 = smov 256   ;;  %s306_s10 = smov 16  }
  0x25   :  { %34 = dma.hbm_to_vmem [thread:$0]  %s371_s1, 4096, %s29_s28, [#allocation6], %s305_s0, %s305_s0, %s306_s10  }
  0x26   :  { %295 = dma.done.wait [#allocation3], 128  }
  0x27   :  { %296 = vsyncadd [#allocation3], 4294967168 }
  0x28   :  { %297 = dma.done.wait [#allocation6], 4096  }
  0x29   :  { %298 = vsyncadd [#allocation6], 4294963200  ;;  %v307_v0 = vmov 0.0   ;;  %v45_v1 = vld [vmem:[#allocation5 + $0x8] sm:$0xff]  ;;  %v47_v2 = vld [vmem:[#allocation5 + $0x18] sm:$0xff]  ;;  %v78_v50 = vlaneseq }
  0x2a   :  { %152 = vmatprep.mubr.f32.mxu0 %v307_v0  ;;  %v44_v3 = vld [vmem:[#allocation5] sm:$0xff]  ;;  %v187_v4 = vpack.c.bf16 %v47_v2, %v45_v1  ;;  %v46_v5 = vld [vmem:[#allocation5 + $0x10] sm:$0xff]  ;;  %v49_v6 = vld [vmem:[#allocation5 + $0x28] sm:$0xff] }
  0x2b   :  { %v51_v7 = vld [vmem:[#allocation5 + $0x38] sm:$0xff]  ;;  %v189_v8 = vpack.c.bf16 %v46_v5, %v44_v3  ;;  %v48_v10 = vld [vmem:[#allocation5 + $0x20] sm:$0xff]  ;;  %v50_v11 = vld [vmem:[#allocation5 + $0x30] sm:$0xff]  ;;  %v79_v51 = vshrl.u32 %v78_v50, 7 }
  0x2c   :  { %v191_v9 = vpack.c.bf16 %v51_v7, %v49_v6  ;;  %v53_v12 = vld [vmem:[#allocation5 + $0x48] sm:$0xff]  ;;  %188 = vmatprep.subr.bf16.mxu0 %v187_v4  ;;  %v55_v13 = vld [vmem:[#allocation5 + $0x58] sm:$0xff]  ;;  %v193_v14 = vpack.c.bf16 %v50_v11, %v48_v10  ;;  %v52_v16 = vld [vmem:[#allocation5 + $0x40] sm:$0xff] }
  0x2d   :  { %190 = vmatpush1.bf16.msra.mxu0 %v189_v8  ;;  %v195_v15 = vpack.c.bf16 %v55_v13, %v53_v12  ;;  %v54_v17 = vld [vmem:[#allocation5 + $0x50] sm:$0xff]  ;;  %v57_v18 = vld [vmem:[#allocation5 + $0x68] sm:$0xff]  ;;  %v59_v19 = vld [vmem:[#allocation5 + $0x78] sm:$0xff]  ;;  %v80_v52 = vsub.s32 0, %v79_v51  ;;  %v84_v54 = vsub.s32 1, %v79_v51 }
  0x2e   :  { %192 = vmatprep.subr.bf16.mxu0 %v191_v9  ;;  %v197_v20 = vpack.c.bf16 %v54_v17, %v52_v16  ;;  %v199_v21 = vpack.c.bf16 %v59_v19, %v57_v18  ;;  %v56_v22 = vld [vmem:[#allocation5 + $0x60] sm:$0xff]  ;;  %v58_v23 = vld [vmem:[#allocation5 + $0x70] sm:$0xff]  ;;  %v61_v24 = vld [vmem:[#allocation5 + $0x88] sm:$0xff] }
  0x2f   :  { %v63_v25 = vld [vmem:[#allocation5 + $0x98] sm:$0xff]  ;;  %v201_v26 = vpack.c.bf16 %v58_v23, %v56_v22  ;;  %v60_v28 = vld [vmem:[#allocation5 + $0x80] sm:$0xff]  ;;  %v62_v29 = vld [vmem:[#allocation5 + $0x90] sm:$0xff] }
  0x30   :  { %v203_v27 = vpack.c.bf16 %v63_v25, %v61_v24  ;;  %v65_v30 = vld [vmem:[#allocation5 + $0xa8] sm:$0xff]  ;;  %v67_v31 = vld [vmem:[#allocation5 + $0xb8] sm:$0xff]  ;;  %v205_v32 = vpack.c.bf16 %v62_v29, %v60_v28  ;;  %v64_v34 = vld [vmem:[#allocation5 + $0xa0] sm:$0xff] }
  0x31   :  { %194 = vmatpush1.bf16.msra.mxu0 %v193_v14  ;;  %v207_v33 = vpack.c.bf16 %v67_v31, %v65_v30  ;;  %v66_v35 = vld [vmem:[#allocation5 + $0xb0] sm:$0xff]  ;;  %v69_v36 = vld [vmem:[#allocation5 + $0xc8] sm:$0xff]  ;;  %v71_v37 = vld [vmem:[#allocation5 + $0xd8] sm:$0xff] }
  0x32   :  { %196 = vmatprep.subr.bf16.mxu0 %v195_v15  ;;  %v209_v38 = vpack.c.bf16 %v66_v35, %v64_v34  ;;  %v211_v39 = vpack.c.bf16 %v71_v37, %v69_v36  ;;  %v68_v40 = vld [vmem:[#allocation5 + $0xc0] sm:$0xff]  ;;  %v70_v41 = vld [vmem:[#allocation5 + $0xd0] sm:$0xff]  ;;  %v73_v42 = vld [vmem:[#allocation5 + $0xe8] sm:$0xff] }
  0x33   :  { %v75_v43 = vld [vmem:[#allocation5 + $0xf8] sm:$0xff]  ;;  %v213_v44 = vpack.c.bf16 %v70_v41, %v68_v40  ;;  %v72_v46 = vld [vmem:[#allocation5 + $0xe0] sm:$0xff]  ;;  %v74_v47 = vld [vmem:[#allocation5 + $0xf0] sm:$0xff] }
  0x34   :  { %v215_v45 = vpack.c.bf16 %v75_v43, %v73_v42  ;;  %v217_v48 = vpack.c.bf16 %v74_v47, %v72_v46  ;;  %v43_v49 = vld [vmem:[#allocation2] sm:$0xff] }
  0x35   :  { %198 = vmatpush1.bf16.msra.mxu0 %v197_v20  ;;  %v76_v53 = vld [vmem:[%s372_s2] sm:$0x3] }
  0x36   :  { %200 = vmatprep.subr.bf16.mxu0 %v199_v21  ;;  %v81_v55 = vrot.slane %v76_v53, %v80_v52  ;;  %v85_v56 = vrot.slane %v76_v53, %v84_v54 }
  0x39   :  { %202 = vmatpush1.bf16.msra.mxu0 %v201_v26 }
  0x3a   :  { %204 = vmatprep.subr.bf16.mxu0 %v203_v27 }
  0x3d   :  { %206 = vmatpush1.bf16.msra.mxu0 %v205_v32 }
  0x3e   :  { %208 = vmatprep.subr.bf16.mxu0 %v207_v33 }
  0x41   :  { %210 = vmatpush1.bf16.msra.mxu0 %v209_v38 }
  0x42   :  { %212 = vmatprep.subr.bf16.mxu0 %v211_v39 }
  0x45   :  { %214 = vmatpush1.bf16.msra.mxu0 %v213_v44 }
  0x46   :  { %216 = vmatprep.subr.bf16.mxu0 %v215_v45 }
  0x49   :  { %218 = vmatpush1.bf16.msra.mxu0 %v217_v48 }
  0x4c   :  { %153 = vmatmul.mubr.f32.vlgmr.msra.gmra.mrb[0].mxu0 %v43_v49 }
 0x11f   :  { %v154_v57 = vpop.f32.mrb[0].mxu0 }
 0x120   :  { %v155_v58 = vadd.f32 %v154_v57, %v81_v55  ;;  %v156_v59 = vpop.f32.mrb[1].mxu0 }
 0x121   :  { %v157_v60 = vadd.f32 %v156_v59, %v85_v56 }
 0x122   :  { %v159_v61 = vmax.f32 %v155_v58, 0.0 }
 0x123   :  { %v160_v62 = vmax.f32 %v157_v60, 0.0 }
 0x125   :  { %v163_v63 = vcombine.low %v159_v61, %v160_v62  ;;  %v164_v0 = vcombine.high %v159_v61, %v160_v62 }
 0x127   :  { %167 = vst [vmem:[#allocation7] sm:$0xff] %v163_v63  ;;  %168 = vst [vmem:[#allocation7 + $0x8] sm:$0xff] %v164_v0 }
 0x128   :  { %173 = vsyncadd [#allocation4], 128  ;;  %s308_s14 = smov [#allocation7]  }
 0x129   :  { %s174_s15 = sshll.u32 %s308_s14, 4  ;;  %s175_s15 = int_to_ptr.vmem [resolvable:$true] %s174_s15 }
 0x12a   :  { %s273_s16 = scalar_lea.vmem %s175_s15, 128  ;;  %s277_s2 = scalar_lea.vmem %s175_s15, 256 }
 0x12b   :  { %p274_p2 = scmp.ne.s32.totalorder %s175_s15, %s273_s16  ;;  %p278_p3 = scmp.lt.s32.totalorder %s175_s15, %s175_s15 }
 0x12c   :  { %p279_p4 = scmp.lt.s32.totalorder %s277_s2, %s273_s16 }
 0x12e   :  { %p280_p5 = por %p279_p4, %p278_p3 }
 0x130   :  { %p281_p6 = pnand %p280_p5, %p274_p2 }
 0x132   :  { %284 = shalt.err (!%p281_p6)
}
 0x133   :  { %s285_s19 = scalar_lea.hbm %s373_s3, 128 }
 0x134   :  { %p286_p7 = scmp.ne.s32.totalorder %s373_s3, %s285_s19  ;;  %p289_p8 = scmp.lt.u32.totalorder %s285_s19, %s373_s3 }
 0x136   :  { %p291_p9 = pnand %p289_p8, %p286_p7 }
 0x138   :  { %294 = shalt.err (!%p291_p9)
}
 0x139   :  { %s309_s24 = smov 128   ;;  %s310_s25 = smov 8  }
 0x13a   :  { %180 = dma.vmem_to_hbm [thread:$0]  %s175_s15, 128, %s373_s3, [#allocation4], %s309_s24, %s309_s24, %s310_s25  }
 0x13b   :  { %299 = dma.done.wait [#allocation4], 256  }
 0x13c   :  { %300 = vsyncadd [#allocation4], 4294967040 }
 0x13d   :  { %184 = vsyncpa [#allocation3], 1 }
 0x13e   :  { %185 = vsyncpa [#allocation6], 1 }
 0x13f   :  { %186 = vsyncpa [#allocation4], 1 }

</bundles_post_ra>
